<compile_context>
chip_gen: v5e
topology: v5e:2x2
jax: 0.10.0
libtpu: 0.0.40
codegen_flags: <defaults>
</compile_context>

<pallas_src>
import jax
import jax.numpy as jnp
from jax.experimental import pallas as pl
from jax.experimental.pallas import tpu as pltpu


def _attention_kernel(hid_ref, enc_ref, wh_ref, we_ref, b_ref, v_ref, out_ref):
    # hid_ref: [B_TILE, dec]        hidden states for this batch tile
    # enc_ref: [src, B_TILE, enc2]  encoder outputs (original src-major layout)
    # wh_ref:  [dec, dec]           attn weight columns acting on `hidden` (transposed)
    # we_ref:  [enc2, dec]          attn weight columns acting on encoder outputs (transposed)
    # b_ref:   [1, dec]             attn bias
    # v_ref:   [1, dec]             v weight (row form)
    # out_ref: [B_TILE, src]        softmax attention weights
    src, bt, enc2 = enc_ref.shape
    dec = wh_ref.shape[1]

    # Hidden projection: src-independent, computed once per batch tile.
    hid_proj = jnp.dot(hid_ref[...], wh_ref[...],
                       preferred_element_type=jnp.float32) + b_ref[...]        # [bt, dec]

    # Encoder projection as one large MXU matmul. B_TILE % 8 == 0 makes the
    # flatten a layout-free view change.
    enc_flat = enc_ref[...].reshape(src * bt, enc2)
    e = jnp.dot(enc_flat, we_ref[...], preferred_element_type=jnp.float32)     # [src*bt, dec]

    energy = jnp.tanh(e.reshape(src, bt, dec) + hid_proj[None, :, :])          # [src, bt, dec]

    # v projection on the VPU (+ lane reduce) instead of an N=1 MXU matmul.
    score = jnp.sum(energy * v_ref[...][None, :, :], axis=-1)                  # [src, bt]

    # Lane-dense output layout: [bt, src] with src on lanes; softmax over lanes.
    score = jnp.transpose(score)                                               # [bt, src]
    score = score - jnp.max(score, axis=-1, keepdims=True)
    p = jnp.exp(score)
    inv = pl.reciprocal(jnp.sum(p, axis=-1, keepdims=True), approx=True)       # EUP vrcp
    out_ref[...] = (p * inv).astype(out_ref.dtype)


def _round_up(x, m):
    return ((x + m - 1) // m) * m


def attention_forward(hidden, encoder_outputs, attn_w, attn_b, v_w, *, b_tile_max=32):
    """
    hidden:          [batch, dec_hid_dim]                         float32
    encoder_outputs: [src_len, batch, enc_hid_dim*2]               float32
    attn_w:          [dec_hid_dim, enc_hid_dim*2 + dec_hid_dim]    (PyTorch Linear.weight)
    attn_b:          [dec_hid_dim]
    v_w:             [1, dec_hid_dim]                              (PyTorch Linear.weight, no bias)
    returns:         [batch, src_len]  softmax attention weights
    """
    src_len, batch, enc2 = encoder_outputs.shape
    dec = hidden.shape[1]

    # --- choose batch tile: multiple of 8, sized against a conservative VMEM budget
    # (double-buffered encoder block must fit default scoped VMEM on v5e/v6e/v7x).
    enc_row_bytes = src_len * enc2 * 4              # one batch row of the encoder block
    vmem_budget = 4 << 20                           # per-buffer budget (x2 for double buffering)
    cap = min(b_tile_max, max(8, vmem_budget // max(enc_row_bytes, 1)))
    cap = max(8, (cap // 8) * 8)

    b_pad = _round_up(batch, 8)
    if b_pad <= cap:
        b_tile = b_pad
    else:
        b_tile = cap
        b_pad = _round_up(batch, b_tile)

    # Pad batch only when needed (toy/odd batches); padded rows are computed and
    # their outputs discarded. Batches already a multiple of the tile: no copy.
    if b_pad != batch:
        hidden = jnp.pad(hidden, ((0, b_pad - batch), (0, 0)))
        encoder_outputs = jnp.pad(encoder_outputs, ((0, 0), (0, b_pad - batch), (0, 0)))

    # --- split the (tiny) concatenated Linear weight; cat order is (hidden, encoder).
    wh_t = attn_w[:, :dec].T                        # [dec, dec]
    we_t = attn_w[:, dec:].T                        # [enc2, dec]
    b2d = attn_b.reshape(1, dec)                    # [1, dec]
    v2d = v_w.reshape(1, dec)                       # [1, dec]  (row form for VPU reduce)

    grid_spec = pltpu.PrefetchScalarGridSpec(
        num_scalar_prefetch=0,
        grid=(b_pad // b_tile,),
        in_specs=[
            pl.BlockSpec((b_tile, dec), lambda i: (i, 0)),
            pl.BlockSpec((src_len, b_tile, enc2), lambda i: (0, i, 0)),
            pl.BlockSpec((dec, dec), lambda i: (0, 0)),
            pl.BlockSpec((enc2, dec), lambda i: (0, 0)),
            pl.BlockSpec((1, dec), lambda i: (0, 0)),
            pl.BlockSpec((1, dec), lambda i: (0, 0)),
        ],
        out_specs=pl.BlockSpec((b_tile, src_len), lambda i: (i, 0)),
    )

    out = pl.pallas_call(
        _attention_kernel,
        out_shape=jax.ShapeDtypeStruct((b_pad, src_len), jnp.float32),
        grid_spec=grid_spec,
        compiler_params=pltpu.CompilerParams(
            dimension_semantics=("parallel",)),
    )(hidden, encoder_outputs, wh_t, we_t, b2d, v2d)

    return out[:batch]


def _reference(hidden, encoder_outputs, attn_w, attn_b, v_w):
    src_len, batch, _ = encoder_outputs.shape
    hid_rep = jnp.repeat(hidden[:, None, :], src_len, axis=1)        # [B, S, dec]
    enc_bm = jnp.transpose(encoder_outputs, (1, 0, 2))               # [B, S, enc2]
    cat = jnp.concatenate([hid_rep, enc_bm], axis=2)                 # [B, S, enc2+dec]
    energy = jnp.tanh(jnp.einsum("bsi,oi->bso", cat, attn_w) + attn_b)
    attention = jnp.einsum("bso,io->bsi", energy, v_w)[..., 0]       # [B, S]
    return jax.nn.softmax(attention, axis=1)


if __name__ == "__main__":
    enc_hid_dim = 16
    dec_hid_dim = 32
    batch = 2
    src_len = 8
    enc2 = enc_hid_dim * 2

    key = jax.random.PRNGKey(0)
    k1, k2, k3, k4, k5 = jax.random.split(key, 5)

    hidden = jax.random.normal(k1, (batch, dec_hid_dim), jnp.float32)
    encoder_outputs = jax.random.normal(k2, (src_len, batch, enc2), jnp.float32)

    # deterministic parameter init (shapes per nn.Linear in __init__)
    attn_w = 0.1 * jax.random.normal(k3, (dec_hid_dim, enc2 + dec_hid_dim), jnp.float32)
    attn_b = 0.1 * jax.random.normal(k4, (dec_hid_dim,), jnp.float32)
    v_w = 0.1 * jax.random.normal(k5, (1, dec_hid_dim), jnp.float32)

    out = attention_forward(hidden, encoder_outputs, attn_w, attn_b, v_w)
    out = jax.block_until_ready(out)

    ref = _reference(hidden, encoder_outputs, attn_w, attn_b, v_w)
    assert out.shape == (batch, src_len)
    # tolerance accounts for the EUP approximate reciprocal in the softmax denominator
    assert jnp.allclose(out, ref, atol=1e-3, rtol=1e-3), "mismatch vs reference"
    assert jnp.allclose(jnp.sum(out, axis=1), jnp.ones((batch,)), atol=1e-3)

    print("KERNEL_OK")
</pallas_src>

<mosaic_0001>
module attributes {stable_mosaic.version = 11 : i64} {
  func.func @_attention_kernel(%arg0: i32, %arg1: memref<8x32xf32, #tpu.memory_space<vmem>>, %arg2: memref<8x8x32xf32, #tpu.memory_space<vmem>>, %arg3: memref<32x32xf32, #tpu.memory_space<vmem>>, %arg4: memref<32x32xf32, #tpu.memory_space<vmem>>, %arg5: memref<1x32xf32, #tpu.memory_space<vmem>>, %arg6: memref<1x32xf32, #tpu.memory_space<vmem>>, %arg7: memref<8x8xf32, #tpu.memory_space<vmem>>) attributes {dimension_semantics = [#tpu.dimension_semantics<parallel>], iteration_bounds = array<i64: 1>, scalar_prefetch = 0 : i64, scratch_operands = 0 : i64, tpu.core_type = #tpu.core_type<tc>, window_params = [{transform_indices = @transform_0, window_bounds = array<i64: 8, 32>}, {transform_indices = @transform_1, window_bounds = array<i64: 8, 8, 32>}, {pipeline_mode = #tpu.pipeline_mode<synchronous>, transform_indices = @transform_2, window_bounds = array<i64: 32, 32>}, {pipeline_mode = #tpu.pipeline_mode<synchronous>, transform_indices = @transform_3, window_bounds = array<i64: 32, 32>}, {pipeline_mode = #tpu.pipeline_mode<synchronous>, transform_indices = @transform_4, window_bounds = array<i64: 1, 32>}, {pipeline_mode = #tpu.pipeline_mode<synchronous>, transform_indices = @transform_5, window_bounds = array<i64: 1, 32>}, {transform_indices = @transform_6, window_bounds = array<i64: 8, 8>}]} {
    %c0 = arith.constant 0 : index
    %c0_0 = arith.constant 0 : index
    %0 = vector.load %arg1[%c0, %c0_0] : memref<8x32xf32, #tpu.memory_space<vmem>>, vector<8x32xf32>
    %c0_1 = arith.constant 0 : index
    %c0_2 = arith.constant 0 : index
    %1 = vector.load %arg3[%c0_1, %c0_2] : memref<32x32xf32, #tpu.memory_space<vmem>>, vector<32x32xf32>
    %cst = arith.constant dense<0.000000e+00> : vector<8x32xf32>
    %2 = tpu.matmul %0, %1, %cst {dimension_numbers = #tpu.dot_dimension_numbers<[1], [0], [0], [1], [0, 0, 1, 1], [], []>} : vector<8x32xf32>, vector<32x32xf32>, vector<8x32xf32> -> vector<8x32xf32>
    %c0_3 = arith.constant 0 : index
    %c0_4 = arith.constant 0 : index
    %3 = vector.load %arg5[%c0_3, %c0_4] : memref<1x32xf32, #tpu.memory_space<vmem>>, vector<1x32xf32>
    %4 = vector.broadcast %3 : vector<1x32xf32> to vector<8x32xf32>
    %5 = arith.addf %2, %4 : vector<8x32xf32>
    %c0_5 = arith.constant 0 : index
    %c0_6 = arith.constant 0 : index
    %c0_7 = arith.constant 0 : index
    %6 = vector.load %arg2[%c0_5, %c0_6, %c0_7] : memref<8x8x32xf32, #tpu.memory_space<vmem>>, vector<8x8x32xf32>
    %7 = vector.shape_cast %6 : vector<8x8x32xf32> to vector<64x32xf32>
    %c0_8 = arith.constant 0 : index
    %c0_9 = arith.constant 0 : index
    %8 = vector.load %arg4[%c0_8, %c0_9] : memref<32x32xf32, #tpu.memory_space<vmem>>, vector<32x32xf32>
    %cst_10 = arith.constant dense<0.000000e+00> : vector<64x32xf32>
    %9 = tpu.matmul %7, %8, %cst_10 {dimension_numbers = #tpu.dot_dimension_numbers<[1], [0], [0], [1], [0, 0, 1, 1], [], []>} : vector<64x32xf32>, vector<32x32xf32>, vector<64x32xf32> -> vector<64x32xf32>
    %10 = vector.shape_cast %9 : vector<64x32xf32> to vector<8x8x32xf32>
    %11 = vector.shape_cast %5 : vector<8x32xf32> to vector<1x8x32xf32>
    %12 = vector.broadcast %11 : vector<1x8x32xf32> to vector<8x8x32xf32>
    %13 = arith.addf %10, %12 : vector<8x8x32xf32>
    %14 = math.tanh %13 : vector<8x8x32xf32>
    %c0_11 = arith.constant 0 : index
    %c0_12 = arith.constant 0 : index
    %15 = vector.load %arg6[%c0_11, %c0_12] : memref<1x32xf32, #tpu.memory_space<vmem>>, vector<1x32xf32>
    %16 = vector.shape_cast %15 : vector<1x32xf32> to vector<1x1x32xf32>
    %17 = vector.broadcast %16 : vector<1x1x32xf32> to vector<8x8x32xf32>
    %18 = arith.mulf %14, %17 : vector<8x8x32xf32>
    %cst_13 = arith.constant dense<0.000000e+00> : vector<8x8xf32>
    %19 = vector.multi_reduction <add>, %18, %cst_13 [2] : vector<8x8x32xf32> to vector<8x8xf32>
    %20 = tpu.transpose %19, [1, 0] : vector<8x8xf32> -> vector<8x8xf32>
    %cst_14 = arith.constant dense<0xFF800000> : vector<8xf32>
    %21 = vector.multi_reduction <maximumf>, %20, %cst_14 [1] : vector<8x8xf32> to vector<8xf32>
    %22 = vector.shape_cast %21 : vector<8xf32> to vector<8x1xf32>
    %23 = vector.broadcast %22 : vector<8x1xf32> to vector<8x8xf32>
    %24 = arith.subf %20, %23 : vector<8x8xf32>
    %25 = math.exp %24 : vector<8x8xf32>
    %cst_15 = arith.constant dense<0.000000e+00> : vector<8xf32>
    %26 = vector.multi_reduction <add>, %25, %cst_15 [1] : vector<8x8xf32> to vector<8xf32>
    %27 = vector.shape_cast %26 : vector<8xf32> to vector<8x1xf32>
    %28 = tpu.reciprocal %27 {approx = true} : vector<8x1xf32> -> vector<8x1xf32>
    %29 = vector.broadcast %28 : vector<8x1xf32> to vector<8x8xf32>
    %30 = arith.mulf %25, %29 : vector<8x8xf32>
    %c0_16 = arith.constant 0 : index
    %c0_17 = arith.constant 0 : index
    %31 = vector.load %arg7[%c0_16, %c0_17] : memref<8x8xf32, #tpu.memory_space<vmem>>, vector<8x8xf32>
    tpu.vector_store %arg7[%c0_16, %c0_17], %30 {strides = array<i32>} : memref<8x8xf32, #tpu.memory_space<vmem>>, vector<8x8xf32>,
    return
  }
  func.func @transform_0(%arg0: i32) -> (i32, i32) {
    %c0_i32 = arith.constant 0 : i32
    %c0_i32_0 = arith.constant 0 : i32
    return %arg0, %c0_i32 : i32, i32
  }
  func.func @transform_1(%arg0: i32) -> (i32, i32, i32) {
    %c0_i32 = arith.constant 0 : i32
    %c0_i32_0 = arith.constant 0 : i32
    %c0_i32_1 = arith.constant 0 : i32
    return %c0_i32, %arg0, %c0_i32_0 : i32, i32, i32
  }
  func.func @transform_2(%arg0: i32) -> (i32, i32) {
    %c0_i32 = arith.constant 0 : i32
    %c0_i32_0 = arith.constant 0 : i32
    %c0_i32_1 = arith.constant 0 : i32
    return %c0_i32, %c0_i32_0 : i32, i32
  }
  func.func @transform_3(%arg0: i32) -> (i32, i32) {
    %c0_i32 = arith.constant 0 : i32
    %c0_i32_0 = arith.constant 0 : i32
    %c0_i32_1 = arith.constant 0 : i32
    return %c0_i32, %c0_i32_0 : i32, i32
  }
  func.func @transform_4(%arg0: i32) -> (i32, i32) {
    %c0_i32 = arith.constant 0 : i32
    %c0_i32_0 = arith.constant 0 : i32
    %c0_i32_1 = arith.constant 0 : i32
    return %c0_i32, %c0_i32_0 : i32, i32
  }
  func.func @transform_5(%arg0: i32) -> (i32, i32) {
    %c0_i32 = arith.constant 0 : i32
    %c0_i32_0 = arith.constant 0 : i32
    %c0_i32_1 = arith.constant 0 : i32
    return %c0_i32, %c0_i32_0 : i32, i32
  }
  func.func @transform_6(%arg0: i32) -> (i32, i32) {
    %c0_i32 = arith.constant 0 : i32
    %c0_i32_0 = arith.constant 0 : i32
    return %arg0, %c0_i32 : i32, i32
  }
}

</mosaic_0001>

<bundles_post_ra>
// kernel: tpu_custom_call.1
= control target key start
LH: loop header
LB: loop body
LE: loop exit
PB: predicated region body
PF: predicated region fallthrough
CT: control target
= control target key end

     0   :  { %11 = vsyncpa [#allocation3], 0  ;;  %s602_s0 = inlined_call_operand.hbm [shape: f32[8,32], index: 0, kind: input, shape index: {}]   ;;  %s603_s1 = inlined_call_operand.hbm [shape: f32[8,8,32], index: 1, kind: input, shape index: {}]   ;;  %s604_s2 = inlined_call_operand.hbm [shape: f32[32,32], index: 2, kind: input, shape index: {}]   ;;  %s605_s3 = inlined_call_operand.hbm [shape: f32[32,32], index: 3, kind: input, shape index: {}]   ;;  %s606_s4 = inlined_call_operand.vmem [shape: f32[1,32], index: 4, kind: input, shape index: {}]   ;;  %s607_s5 = inlined_call_operand.vmem [shape: f32[1,32], index: 5, kind: input, shape index: {}]   ;;  %s608_s6 = inlined_call_operand.hbm [shape: f32[8,8], index: 6, kind: output, shape index: {}]  }
   0x1   :  { %12 = vsyncpa [#allocation6], 0 }
   0x2   :  { %13 = vsyncpa [#allocation9], 0  ;;  %s30_s23 = sshll.u32 %s603_s1, 4  ;;  %s31_s23 = int_to_ptr.hbm [resolvable:$true] %s30_s23 }
   0x3   :  { %14 = vsyncpa [#allocation4], 0  ;;  %s519_s24 = smov [#allocation5]   ;;  %s20_s28 = sshll.u32 %s602_s0, 4  ;;  %s21_s28 = int_to_ptr.hbm [resolvable:$true] %s20_s28 }
   0x4   :  { %s32_s25 = sshll.u32 %s519_s24, 4  ;;  %s520_s29 = smov 128   ;;  %s33_s25 = int_to_ptr.vmem [resolvable:$true] %s32_s25 }
   0x5   :  { %s521_s30 = smov 8   ;;  %s522_s7 = smov [#allocation2]  }
   0x6   :  { %38 = dma.hbm_to_vmem [thread:$0]  %s31_s23, 1024, %s33_s25, [#allocation6], %s520_s29, %s520_s29, %s521_s30  }
   0x7   :  { %s22_s8 = sshll.u32 %s522_s7, 4  ;;  %s43_s11 = sshll.u32 %s604_s2, 4  ;;  %s23_s8 = int_to_ptr.vmem [resolvable:$true] %s22_s8  ;;  %s44_s11 = int_to_ptr.hbm [resolvable:$true] %s43_s11 }
   0x8   :  { %25 = dma.hbm_to_vmem [thread:$0]  %s21_s28, 128, %s23_s8, [#allocation3]  }
   0x9   :  { %s56_s13 = sshll.u32 %s605_s3, 4  ;;  %s523_s14 = smov [#allocation7]   ;;  %s57_s13 = int_to_ptr.hbm [resolvable:$true] %s56_s13 }
   0xa   :  { %s45_s15 = sshll.u32 %s523_s14, 4  ;;  %s524_s0 = smov [#allocation8]   ;;  %s46_s15 = int_to_ptr.vmem [resolvable:$true] %s45_s15 }
   0xb   :  { %51 = dma.hbm_to_vmem [thread:$0]  %s44_s11, 512, %s46_s15, [#allocation6], %s520_s29, %s520_s29, %s521_s30  }
   0xc   :  { %s58_s16 = sshll.u32 %s524_s0, 4  ;;  %s59_s16 = int_to_ptr.vmem [resolvable:$true] %s58_s16 }
   0xd   :  { %64 = dma.hbm_to_vmem [thread:$0]  %s57_s13, 512, %s59_s16, [#allocation9], %s520_s29, %s520_s29, %s521_s30  }
   0xe   :  { %511 = dma.done.wait [#allocation3], 128  }
   0xf   :  { %512 = vsyncadd [#allocation3], 4294967168 }
  0x10   :  { %513 = dma.done.wait [#allocation6], 1536  }
  0x11   :  { %514 = vsyncadd [#allocation6], 4294965760 }
  0x12   :  { %515 = dma.done.wait [#allocation9], 512  }
  0x13   :  { %516 = vsyncadd [#allocation9], 4294966784  ;;  %v89_v0 = vld [vmem:[#allocation7 + $0x18] sm:$0xff]  ;;  %v88_v2 = vld [vmem:[#allocation7 + $0x10] sm:$0xff]  ;;  %vm94_vm0 = vcmask 261120   ;;  %v255_v63 = vlaneseq  ;;  %vm265_vm1 = vcmask 1041409  }
  0x14   :  { %v129_v1 = vld [vmem:[#allocation8 + $0x18] sm:$0xff]  ;;  %110 = vmatpush.msra.mxu0 %v89_v0  ;;  %v128_v3 = vld [vmem:[#allocation8 + $0x10] sm:$0xff]  ;;  %v87_v4 = vld [vmem:[#allocation7 + $0x8] sm:$0xff]  ;;  %vm267_vm2 = vcmask 1042434   ;;  %vm269_vm3 = vcmask 1043459   ;;  %vm271_vm4 = vcmask 1044484  }
  0x15   :  { %353 = vmatpush.msra.mxu2 %v129_v1  ;;  %354 = vmatpush.msra.mxu3 %v129_v1  ;;  %v127_v5 = vld [vmem:[#allocation8 + $0x8] sm:$0xff]  ;;  %v86_v6 = vld [vmem:[#allocation7] sm:$0xff]  ;;  %v85_v8 = vld [vmem:[#allocation2] sm:$0xff]  ;;  %vm273_vm5 = vcmask 1045509   ;;  %vm275_vm6 = vcmask 1046534   ;;  %vm277_vm7 = vcmask 1047559  }
  0x16   :  { %166 = vmatpush.msra.mxu1 %v129_v1  ;;  %111 = vmatpush.msra.mxu0 %v88_v2  ;;  %v126_v7 = vld [vmem:[#allocation8] sm:$0xff]  ;;  %v120_v9 = vld [vmem:[#allocation5 + $0x10] sm:$0xff]  ;;  %v123_v10 = vld [vmem:[#allocation5 + $0x28] sm:$0xff]  ;;  %v256_v2 = vand.u32 127, %v255_v63  ;;  %vm312_vm8 = vcmask 64512   ;;  %s332_s21 = sshll.u32 %s608_s6, 4  ;;  %s333_s21 = int_to_ptr.hbm [resolvable:$true] %s332_s21 }
  0x17   :  { %355 = vmatpush.msra.mxu2 %v128_v3  ;;  %356 = vmatpush.msra.mxu3 %v128_v3  ;;  %v118_v11 = vld [vmem:[#allocation5] sm:$0xff]  ;;  %v121_v12 = vld [vmem:[#allocation5 + $0x18] sm:$0xff]  ;;  %v124_v13 = vld [vmem:[#allocation5 + $0x30] sm:$0xff] }
  0x18   :  { %167 = vmatpush.msra.mxu1 %v128_v3  ;;  %112 = vmatpush.msra.mxu0 %v87_v4  ;;  %v119_v14 = vld [vmem:[#allocation5 + $0x8] sm:$0xff]  ;;  %v122_v15 = vld [vmem:[#allocation5 + $0x20] sm:$0xff]  ;;  %v125_v16 = vld [vmem:[#allocation5 + $0x38] sm:$0xff] }
  0x19   :  { %357 = vmatpush.msra.mxu2 %v127_v5  ;;  %358 = vmatpush.msra.mxu3 %v127_v5  ;;  %v369_v17 = vld [vmem:[%s606_s4] ss:$0 sm:$0xff]  ;;  %s525_s4 = smov [#allocation10]  }
  0x1a   :  { %168 = vmatpush.msra.mxu1 %v127_v5  ;;  %113 = vmatpush.msra.mxu0 %v86_v6  ;;  %v370_v25 = vld [vmem:[%s607_s5] ss:$0 sm:$0xff]  ;;  %s330_s5 = sshll.u32 %s525_s4, 4  ;;  %s331_s5 = int_to_ptr.vmem [resolvable:$true] %s330_s5 }
  0x1b   :  { %359 = vmatpush.msra.mxu2 %v126_v7  ;;  %360 = vmatpush.msra.mxu3 %v126_v7 }
  0x1c   :  { %344 = vmatmul.msk.f32.vlgmr.msra.gmra.mxu0 %vm94_vm0, %v85_v8  ;;  %347 = vmatmul.msk.f32.vlgmr.msra.gmra.mxu2 %vm94_vm0, %v120_v9 }
  0x1d   :  { %350 = vmatmul.msk.f32.vlgmr.msra.gmra.mxu3 %vm94_vm0, %v123_v10  ;;  %169 = vmatpush.msra.mxu1 %v126_v7 }
  0x1e   :  { %345 = vmatmul.msk.f32.vlgmr.msra.gmra.mxu1 %vm94_vm0, %v118_v11 }
  0x24   :  { %348 = vmatmul.msk.f32.gmra.mxu2 %vm94_vm0, %v121_v12 }
  0x25   :  { %351 = vmatmul.msk.f32.gmra.mxu3 %vm94_vm0, %v124_v13 }
  0x26   :  { %346 = vmatmul.msk.f32.gmra.mxu1 %vm94_vm0, %v119_v14 }
  0x2c   :  { %349 = vmatmul.msk.f32.gmra.mxu2 %vm94_vm0, %v122_v15 }
  0x2d   :  { %352 = vmatmul.msk.f32.gmra.mxu3 %vm94_vm0, %v125_v16 }
  0x99   :  { %v115_v18 = vpop.f32.mrf.mxu0 }
  0x9a   :  { %v116_v19 = vadd.f32 %v369_v17, %v115_v18 }
  0x9b   :  { %v171_v20 = vpop.f32.mrf.mxu1 }
  0x9c   :  { %v195_v21 = vadd.f32 %v171_v20, %v116_v19 }
  0x9e   :  { %371 = vtanh.f32 %v195_v21 }
  0x9f   :  { %v177_v22 = vpop.f32.mrf.mxu2 }
  0xa0   :  { %v186_v23 = vpop.f32.mrf.mxu3  ;;  %v197_v24 = vadd.f32 %v177_v22, %v116_v19 }
  0xa1   :  { %v200_v48 = vadd.f32 %v186_v23, %v116_v19 }
  0xa2   :  { %373 = vtanh.f32 %v197_v24 }
  0xa3   :  { %v174_v26 = vpop.f32.mrf.mxu1 }
  0xa4   :  { %v372_v27 = vpop.eup %371  ;;  %v196_v28 = vadd.f32 %v174_v26, %v116_v19 }
  0xa5   :  { %v215_v29 = vmul.f32 %v372_v27, %v370_v25 }
  0xa6   :  { %375 = vtanh.f32 %v196_v28 }
  0xa7   :  { %v180_v30 = vpop.f32.mrf.mxu2  ;;  %v223_v32 = vsel %vm94_vm0, %v215_v29, 0.0 }
  0xa8   :  { %v189_v31 = vpop.f32.mrf.mxu3  ;;  %v374_v33 = vpop.eup %373  ;;  %v198_v34 = vadd.f32 %v180_v30, %v116_v19  ;;  %224 = vadd.xlane.f32.xlu0 %v223_v32 }
  0xa9   :  { %v201_v35 = vadd.f32 %v189_v31, %v116_v19  ;;  %v217_v36 = vmul.f32 %v374_v33, %v370_v25 }
  0xaa   :  { %377 = vtanh.f32 %v198_v34 }
  0xab   :  { %379 = vtanh.f32 %v201_v35  ;;  %v229_v37 = vsel %vm94_vm0, %v217_v36, 0.0 }
  0xac   :  { %v376_v38 = vpop.eup %375  ;;  %230 = vadd.xlane.f32.xlu1 %v229_v37 }
  0xad   :  { %v216_v39 = vmul.f32 %v376_v38, %v370_v25 }
  0xaf   :  { %v183_v40 = vpop.f32.mrf.mxu2  ;;  %v226_v42 = vsel %vm94_vm0, %v216_v39, 0.0 }
  0xb0   :  { %v192_v41 = vpop.f32.mrf.mxu3  ;;  %v378_v43 = vpop.eup %377  ;;  %v199_v44 = vadd.f32 %v183_v40, %v116_v19  ;;  %227 = vadd.xlane.f32.xlu0 %v226_v42 }
  0xb1   :  { %v202_v45 = vadd.f32 %v192_v41, %v116_v19  ;;  %v380_v46 = vpop.eup %379  ;;  %v218_v47 = vmul.f32 %v378_v43, %v370_v25 }
  0xb2   :  { %381 = vtanh.f32 %v199_v44  ;;  %v221_v50 = vmul.f32 %v380_v46, %v370_v25 }
  0xb3   :  { %383 = vtanh.f32 %v202_v45  ;;  %v232_v49 = vsel %vm94_vm0, %v218_v47, 0.0 }
  0xb4   :  { %233 = vadd.xlane.f32.xlu1 %v232_v49  ;;  %385 = vtanh.f32 %v200_v48  ;;  %v241_v51 = vsel %vm94_vm0, %v221_v50, 0.0 }
  0xb8   :  { %v382_v52 = vpop.eup %381  ;;  %242 = vadd.xlane.f32.xlu0 %v241_v51 }
  0xb9   :  { %v384_v53 = vpop.eup %383  ;;  %v219_v54 = vmul.f32 %v382_v52, %v370_v25 }
  0xba   :  { %v222_v55 = vmul.f32 %v384_v53, %v370_v25  ;;  %v386_v57 = vpop.eup %385 }
  0xbb   :  { %v235_v56 = vsel %vm94_vm0, %v219_v54, 0.0  ;;  %v220_v59 = vmul.f32 %v386_v57, %v370_v25 }
  0xbc   :  { %236 = vadd.xlane.f32.xlu2 %v235_v56  ;;  %v244_v58 = vsel %vm94_vm0, %v222_v55, 0.0 }
  0xbd   :  { %245 = vadd.xlane.f32.xlu1 %v244_v58  ;;  %v238_v60 = vsel %vm94_vm0, %v220_v59, 0.0 }
  0xc4   :  { %239 = vadd.xlane.f32.xlu2 %v238_v60 }
 0x11b   :  { %v225_v61 = vpop.xlane.xlu0 %224 }
 0x11c   :  { %v257_v4 = vperm.slane %v225_v61, %v256_v2 }
 0x11f   :  { %v231_v62 = vpop.xlane.xlu1 %230 }
 0x120   :  { %v259_v8 = vperm.slane %v231_v62, %v256_v2 }
 0x123   :  { %v228_v0 = vpop.xlane.xlu0 %227 }
 0x124   :  { %v258_v5 = vperm.slane %v228_v0, %v256_v2 }
 0x126   :  { %v266_v6 = vsel %vm265_vm1, %v258_v5, %v257_v4 }
 0x127   :  { %v234_v1 = vpop.xlane.xlu1 %233  ;;  %v268_v11 = vsel %vm267_vm2, %v259_v8, %v266_v6 }
 0x128   :  { %v260_v7 = vperm.slane %v234_v1, %v256_v2 }
 0x12a   :  { %v270_v14 = vsel %vm269_vm3, %v260_v7, %v268_v11 }
 0x12b   :  { %v243_v10 = vpop.xlane.xlu0 %242 }
 0x12c   :  { %v263_v16 = vperm.slane %v243_v10, %v256_v2 }
 0x12f   :  { %v237_v3 = vpop.xlane.xlu2 %236 }
 0x130   :  { %v261_v9 = vperm.slane %v237_v3, %v256_v2  ;;  %v246_v12 = vpop.xlane.xlu1 %245 }
 0x131   :  { %v264_v18 = vperm.slane %v246_v12, %v256_v2 }
 0x132   :  { %v272_v17 = vsel %vm271_vm4, %v261_v9, %v270_v14 }
 0x137   :  { %v240_v13 = vpop.xlane.xlu2 %239 }
 0x138   :  { %v262_v15 = vperm.slane %v240_v13, %v256_v2 }
 0x13a   :  { %v274_v19 = vsel %vm273_vm5, %v262_v15, %v272_v17 }
 0x13b   :  { %v276_v20 = vsel %vm275_vm6, %v263_v16, %v274_v19 }
 0x13c   :  { %v278_v21 = vsel %vm277_vm7, %v264_v18, %v276_v20 }
 0x13d   :  { %280 = vxpose.xlu2.b32.start.end [1/1] (short) (narrow) %v278_v21, 8 }
 0x1d6   :  { %v296_v22 = vpop.trf.xlu2 }
 0x1d7   :  { %v313_v23 = vsel %vm312_vm8, %v296_v22, -inf }
 0x1d8   :  { %314 = vmax.xlane.f32.xlu0 %v313_v23 }
 0x24b   :  { %v315_v24 = vpop.xlane.xlu0 %314 }
 0x24c   :  { %v316_v25 = vsub.f32 %v296_v22, %v315_v24 }
 0x24e   :  { %v317_v26 = vmul.f32 1.442695, %v316_v25 }
 0x250   :  { %387 = vpow2.f32 %v317_v26 }
 0x256   :  { %v388_v27 = vpop.eup %387 }
 0x257   :  { %v319_v28 = vsel %vm312_vm8, %v388_v27, 0.0 }
 0x258   :  { %320 = vadd.xlane.f32.xlu1 %v319_v28 }
 0x2cb   :  { %v321_v29 = vpop.xlane.xlu1 %320 }
 0x2cc   :  { %389 = vrcp.f32 %v321_v29 }
 0x2d2   :  { %v390_v30 = vpop.eup %389 }
 0x2d3   :  { %v323_v31 = vmul.f32 %v390_v30, %v388_v27 }
 0x2d5   :  { %324 = vst.msk [vmem:[#allocation10] sm:$0xff] %vm312_vm8, %v323_v31 }
 0x2d6   :  { %335 = dma.vmem_to_hbm [thread:$0]  %s331_s5, 128, %s333_s21, [#allocation4]  }
 0x2d7   :  { %517 = dma.done.wait [#allocation4], 128  }
 0x2d8   :  { %518 = vsyncadd [#allocation4], 4294967168 }
 0x2d9   :  { %340 = vsyncpa [#allocation3], 1 }
 0x2da   :  { %341 = vsyncpa [#allocation6], 1 }
 0x2db   :  { %342 = vsyncpa [#allocation9], 1 }
 0x2dc   :  { %343 = vsyncpa [#allocation4], 1 }

</bundles_post_ra>
